<compile_context>
chip_gen: v7x
topology: tpu7x:2x2x1
jax: 0.10.0
libtpu: 0.0.40
codegen_flags: <defaults>
</compile_context>

<pallas_src>
from functools import partial

import jax
import jax.numpy as jnp
from jax.experimental import pallas as pl
from jax.experimental.pallas import tpu as pltpu

IN_FEATURES = 300
IN_PADDED = 384        # 3 * 128 lanes (lane-aligned K)
HIDDEN = 128
OUT_FEATURES = 4
OUT_PADDED = 128       # lane-dense output slab


def policy_kernel(x_ref, w1_ref, b1_ref, w2_ref, b2_ref, out_ref):
    x = x_ref[...]                                        # (B, 384)   bf16
    w1 = w1_ref[...]                                      # (384, 128) bf16
    b1 = b1_ref[...]                                      # (1, 128)   f32
    w2 = w2_ref[...]                                      # (128, 128) bf16
    b2 = b2_ref[...]                                      # (1, 128)   f32

    # fc1 + ReLU (bf16 operands, f32 accumulate on the MXU)
    h = jnp.dot(x, w1, preferred_element_type=jnp.float32) + b1
    h = jnp.maximum(h, 0.0)

    # fc2 (128-wide padded N -> full MXU tile, unmasked stores downstream)
    logits = jnp.dot(h.astype(jnp.bfloat16), w2,
                     preferred_element_type=jnp.float32) + b2   # (B, 128)

    # softmax over dim=0 (batch axis), numerically stabilized; reciprocal on
    # the EUP (approx) instead of a VALU divide.
    m = jnp.max(logits, axis=0, keepdims=True)             # (1, 128)
    e = jnp.exp(logits - m)                                 # (B, 128)
    denom = jnp.sum(e, axis=0, keepdims=True)               # (1, 128)
    out_ref[...] = e * pl.reciprocal(denom, approx=True)


@partial(jax.jit, static_argnames=())
def policy_forward(x, w1, b1, w2, b2):
    """x: (B, 300) f32; w1: (300,128); b1: (1,128); w2: (128,4); b2: (1,4).

    Returns softmax-over-dim0 probabilities of shape (B, 4), matching the
    PyTorch reference semantics.
    """
    B = x.shape[0]

    # --- lane-align / zero-pad + bf16-cast in the wrapper (zeros are inert) ---
    x_p = jnp.pad(x.astype(jnp.bfloat16),
                  ((0, 0), (0, IN_PADDED - IN_FEATURES)))
    w1_p = jnp.pad(w1.astype(jnp.bfloat16),
                   ((0, IN_PADDED - IN_FEATURES), (0, 0)))
    w2_p = jnp.pad(w2.astype(jnp.bfloat16),
                   ((0, 0), (0, OUT_PADDED - OUT_FEATURES)))
    b2_p = jnp.pad(b2.astype(jnp.float32),
                   ((0, 0), (0, OUT_PADDED - OUT_FEATURES)))
    b1_p = b1.astype(jnp.float32)                          # already (1, 128)

    flops = 2 * B * IN_PADDED * HIDDEN + 2 * B * HIDDEN * OUT_PADDED
    transcendentals = B * OUT_PADDED + OUT_PADDED          # exp + reciprocal
    bytes_accessed = (x_p.size * 2 + w1_p.size * 2 + b1_p.size * 4
                      + w2_p.size * 2 + b2_p.size * 4 + B * OUT_PADDED * 4)

    out_padded = pl.pallas_call(
        policy_kernel,
        out_shape=jax.ShapeDtypeStruct((B, OUT_PADDED), jnp.float32),
        in_specs=[
            pl.BlockSpec(memory_space=pltpu.MemorySpace.VMEM),
            pl.BlockSpec(memory_space=pltpu.MemorySpace.VMEM),
            pl.BlockSpec(memory_space=pltpu.MemorySpace.VMEM),
            pl.BlockSpec(memory_space=pltpu.MemorySpace.VMEM),
            pl.BlockSpec(memory_space=pltpu.MemorySpace.VMEM),
        ],
        out_specs=pl.BlockSpec(memory_space=pltpu.MemorySpace.VMEM),
        compiler_params=pltpu.CompilerParams(
            vmem_limit_bytes=32 * 1024 * 1024),
        cost_estimate=pl.CostEstimate(
            flops=flops,
            transcendentals=transcendentals,
            bytes_accessed=bytes_accessed),
    )(x_p, w1_p, b1_p, w2_p, b2_p)

    # Padded columns (4..127) are discarded here.
    return out_padded[:, :OUT_FEATURES]


def init_params(key):
    """Deterministic init mimicking PyTorch Linear default (U[-1/sqrt(fan_in), +])."""
    k1, k2, k3, k4 = jax.random.split(key, 4)
    bound1 = 1.0 / jnp.sqrt(IN_FEATURES)
    bound2 = 1.0 / jnp.sqrt(HIDDEN)
    w1 = jax.random.uniform(k1, (IN_FEATURES, HIDDEN), jnp.float32, -bound1, bound1)
    b1 = jax.random.uniform(k2, (1, HIDDEN), jnp.float32, -bound1, bound1)
    w2 = jax.random.uniform(k3, (HIDDEN, OUT_FEATURES), jnp.float32, -bound2, bound2)
    b2 = jax.random.uniform(k4, (1, OUT_FEATURES), jnp.float32, -bound2, bound2)
    return w1, b1, w2, b2


def reference_forward(x, w1, b1, w2, b2):
    """Pure-JAX f32 reference with identical semantics to the PyTorch module."""
    h = jnp.maximum(x @ w1 + b1, 0.0)
    logits = h @ w2 + b2
    return jax.nn.softmax(logits, axis=0)


if __name__ == "__main__":
    key = jax.random.PRNGKey(0)
    k_params, k_x = jax.random.split(key)

    w1, b1, w2, b2 = init_params(k_params)
    B = 2
    x = jax.random.normal(k_x, (B, IN_FEATURES), jnp.float32)

    out = policy_forward(x, w1, b1, w2, b2)
    out = jax.block_until_ready(out)

    # sanity check against the pure-JAX f32 reference (loosened tolerance for
    # the bf16 matmul operands + approx reciprocal)
    ref = reference_forward(x, w1, b1, w2, b2)
    assert out.shape == (B, OUT_FEATURES)
    assert jnp.allclose(out, ref, atol=3e-2, rtol=3e-2), "mismatch vs reference"
    # each column (action) sums to 1 because softmax is over dim=0
    assert jnp.allclose(jnp.sum(out, axis=0), jnp.ones((OUT_FEATURES,)), atol=1e-2)

    print("KERNEL_OK")
</pallas_src>

<mosaic_0001>
module attributes {stable_mosaic.version = 11 : i64} {
  func.func @policy_kernel(%arg0: memref<2x384xbf16, #tpu.memory_space<vmem>>, %arg1: memref<384x128xbf16, #tpu.memory_space<vmem>>, %arg2: memref<1x128xf32, #tpu.memory_space<vmem>>, %arg3: memref<128x128xbf16, #tpu.memory_space<vmem>>, %arg4: memref<1x128xf32, #tpu.memory_space<vmem>>, %arg5: memref<2x128xf32, #tpu.memory_space<vmem>>) attributes {dimension_semantics = [], scalar_prefetch = 0 : i64, scratch_operands = 0 : i64, tpu.core_type = #tpu.core_type<tc>} {
    %c0 = arith.constant 0 : index
    %c0_0 = arith.constant 0 : index
    %0 = vector.load %arg0[%c0, %c0_0] : memref<2x384xbf16, #tpu.memory_space<vmem>>, vector<2x384xbf16>
    %c0_1 = arith.constant 0 : index
    %c0_2 = arith.constant 0 : index
    %1 = vector.load %arg1[%c0_1, %c0_2] : memref<384x128xbf16, #tpu.memory_space<vmem>>, vector<384x128xbf16>
    %c0_3 = arith.constant 0 : index
    %c0_4 = arith.constant 0 : index
    %2 = vector.load %arg2[%c0_3, %c0_4] : memref<1x128xf32, #tpu.memory_space<vmem>>, vector<1x128xf32>
    %c0_5 = arith.constant 0 : index
    %c0_6 = arith.constant 0 : index
    %3 = vector.load %arg3[%c0_5, %c0_6] : memref<128x128xbf16, #tpu.memory_space<vmem>>, vector<128x128xbf16>
    %c0_7 = arith.constant 0 : index
    %c0_8 = arith.constant 0 : index
    %4 = vector.load %arg4[%c0_7, %c0_8] : memref<1x128xf32, #tpu.memory_space<vmem>>, vector<1x128xf32>
    %cst = arith.constant dense<0.000000e+00> : vector<2x128xf32>
    %5 = tpu.matmul %0, %1, %cst {dimension_numbers = #tpu.dot_dimension_numbers<[1], [0], [0], [1], [0, 0, 1, 1], [], []>} : vector<2x384xbf16>, vector<384x128xbf16>, vector<2x128xf32> -> vector<2x128xf32>
    %6 = vector.broadcast %2 : vector<1x128xf32> to vector<2x128xf32>
    %7 = arith.addf %5, %6 : vector<2x128xf32>
    %cst_9 = arith.constant 0.000000e+00 : f32
    %8 = vector.broadcast %cst_9 : f32 to vector<2x128xf32>
    %9 = arith.maximumf %7, %8 : vector<2x128xf32>
    %10 = arith.truncf %9 : vector<2x128xf32> to vector<2x128xbf16>
    %cst_10 = arith.constant dense<0.000000e+00> : vector<2x128xf32>
    %11 = tpu.matmul %10, %3, %cst_10 {dimension_numbers = #tpu.dot_dimension_numbers<[1], [0], [0], [1], [0, 0, 1, 1], [], []>} : vector<2x128xbf16>, vector<128x128xbf16>, vector<2x128xf32> -> vector<2x128xf32>
    %12 = vector.broadcast %4 : vector<1x128xf32> to vector<2x128xf32>
    %13 = arith.addf %11, %12 : vector<2x128xf32>
    %cst_11 = arith.constant dense<0xFF800000> : vector<128xf32>
    %14 = vector.multi_reduction <maximumf>, %13, %cst_11 [0] : vector<2x128xf32> to vector<128xf32>
    %15 = vector.shape_cast %14 : vector<128xf32> to vector<1x128xf32>
    %16 = vector.broadcast %15 : vector<1x128xf32> to vector<2x128xf32>
    %17 = arith.subf %13, %16 : vector<2x128xf32>
    %18 = math.exp %17 : vector<2x128xf32>
    %cst_12 = arith.constant dense<0.000000e+00> : vector<128xf32>
    %19 = vector.multi_reduction <add>, %18, %cst_12 [0] : vector<2x128xf32> to vector<128xf32>
    %20 = vector.shape_cast %19 : vector<128xf32> to vector<1x128xf32>
    %21 = tpu.reciprocal %20 {approx = true} : vector<1x128xf32> -> vector<1x128xf32>
    %22 = vector.broadcast %21 : vector<1x128xf32> to vector<2x128xf32>
    %23 = arith.mulf %18, %22 : vector<2x128xf32>
    %c0_13 = arith.constant 0 : index
    %c0_14 = arith.constant 0 : index
    %24 = vector.load %arg5[%c0_13, %c0_14] : memref<2x128xf32, #tpu.memory_space<vmem>>, vector<2x128xf32>
    tpu.vector_store %arg5[%c0_13, %c0_14], %23 {strides = array<i32>} : memref<2x128xf32, #tpu.memory_space<vmem>>, vector<2x128xf32>,
    return
  }
}

</mosaic_0001>

<bundles_post_ra>
// kernel: policy_forward.1
= control target key start
LH: loop header
LB: loop body
LE: loop exit
PB: predicated region body
PF: predicated region fallthrough
CT: control target
= control target key end

     0   :  { %v656_v2 = vmov 0.0   ;;  %vm657_vm0 = vmmov 0   ;;  %v107_v20 = vlaneseq  ;;  %v658_v25 = vmov 1966171168   ;;  %s829_s0 = inlined_call_operand.vmem [shape: bf16[2,384], index: 0, kind: input, shape index: {}]   ;;  %s830_s1 = inlined_call_operand.vmem [shape: bf16[384,128], index: 1, kind: input, shape index: {}]   ;;  %s831_s2 = inlined_call_operand.vmem [shape: f32[1,128], index: 2, kind: input, shape index: {}]   ;;  %s832_s3 = inlined_call_operand.vmem [shape: bf16[128,128], index: 3, kind: input, shape index: {}]   ;;  %s833_s4 = inlined_call_operand.vmem [shape: f32[1,128], index: 4, kind: input, shape index: {}]   ;;  %s834_s5 = inlined_call_operand.hbm [shape: f32[2,128], index: 5, kind: output, shape index: {}]  }
   0x1   :  { %v596_v0 = vld [vmem:[%s830_s1 + $0x40] sm:$0xff]   ;;  %552 = vmatprep.subr.bf16.mxu1 %v656_v2  ;;  %568 = vmatprep.mubr.msk.bf16.mxu1 %vm657_vm0, %v656_v2  ;;  %v599_v4 = vld [vmem:[%s830_s1 + $0x48] sm:$0xff]   ;;  %v602_v7 = vld [vmem:[%s830_s1 + $0x50] sm:$0xff]   ;;  %v105_v26 = vunpack.c.l.s4 %v658_v25 }
   0x2   :  { %v597_v1 = vld [vmem:[%s830_s1] sm:$0xff]   ;;  %512 = vmatprep.subr.bf16.mxu0 %v596_v0  ;;  %v600_v5 = vld [vmem:[%s830_s1 + $0x8] sm:$0xff]   ;;  %v603_v8 = vld [vmem:[%s830_s1 + $0x10] sm:$0xff]   ;;  %v108_v27 = vshrl.u32 %v107_v20, 7 }
   0x3   :  { %v598_v3 = vld [vmem:[%s830_s1 + $0x80] sm:$0xff]   ;;  %513 = vmatpush3.bf16.msra.mxu0 %v597_v1  ;;  %v601_v6 = vld [vmem:[%s830_s1 + $0x88] sm:$0xff]   ;;  %v604_v9 = vld [vmem:[%s830_s1 + $0x90] sm:$0xff]   ;;  %v106_v29 = vunpack.c.0.s8 %v105_v26 }
   0x4   :  { %553 = vmatpush3.bf16.msra.mxu1 %v598_v3  ;;  %514 = vmatprep.subr.bf16.mxu0 %v599_v4  ;;  %v605_v10 = vld [vmem:[%s830_s1 + $0x58] sm:$0xff]   ;;  %v608_v13 = vld [vmem:[%s830_s1 + $0x60] sm:$0xff]   ;;  %v611_v16 = vld [vmem:[%s830_s1 + $0x68] sm:$0xff]  }
   0x5   :  { %554 = vmatprep.subr.bf16.mxu1 %v656_v2  ;;  %v606_v11 = vld [vmem:[%s830_s1 + $0x18] sm:$0xff]   ;;  %v609_v14 = vld [vmem:[%s830_s1 + $0x20] sm:$0xff]   ;;  %v612_v17 = vld [vmem:[%s830_s1 + $0x28] sm:$0xff]   ;;  %v109_v31 = vsub.s32 %v106_v29, %v108_v27 }
   0x6   :  { %v607_v12 = vld [vmem:[%s830_s1 + $0x98] sm:$0xff]   ;;  %v610_v15 = vld [vmem:[%s830_s1 + $0xa0] sm:$0xff]   ;;  %v613_v18 = vld [vmem:[%s830_s1 + $0xa8] sm:$0xff]  }
   0x7   :  { %515 = vmatpush3.bf16.msra.mxu0 %v600_v5  ;;  %v614_v19 = vld [vmem:[%s830_s1 + $0x70] sm:$0xff]   ;;  %v478_v23 = vld.sshfl [vmem:[%s829_s0] sm:$0x13 pattern:$0x75316420]  ;;  %v617_v24 = vld [vmem:[%s830_s1 + $0x78] sm:$0xff]  }
   0x8   :  { %555 = vmatpush3.bf16.msra.mxu1 %v601_v6  ;;  %516 = vmatprep.subr.bf16.mxu0 %v602_v7  ;;  %v615_v21 = vld [vmem:[%s830_s1 + $0x30] sm:$0xff]   ;;  %v103_v28 = vcombine.high %v478_v23, %v478_v23  ;;  %v618_v30 = vld [vmem:[%s830_s1 + $0x38] sm:$0xff]   ;;  %v620_v33 = vld [vmem:[%s832_s3] sm:$0xff]   ;;  %v110_v35 = vrot.slane %v478_v23, %v109_v31 }
   0x9   :  { %556 = vmatprep.subr.bf16.mxu1 %v656_v2  ;;  %v616_v22 = vld [vmem:[%s830_s1 + $0xb0] sm:$0xff]   ;;  %v619_v32 = vld [vmem:[%s830_s1 + $0xb8] sm:$0xff]  }
   0xa   :  { %v117_v34 = vrot.slane %v103_v28, %v109_v31  ;;  %v118_v36 = vcombine.high %v110_v35, %v110_v35 }
   0xb   :  { %517 = vmatpush3.bf16.msra.mxu0 %v603_v8 }
   0xc   :  { %557 = vmatpush3.bf16.msra.mxu1 %v604_v9  ;;  %518 = vmatprep.subr.bf16.mxu0 %v605_v10 }
   0xd   :  { %558 = vmatprep.subr.bf16.mxu1 %v656_v2  ;;  %298 = vmatprep.mubr.bf16.mxu0 %v117_v34 }
   0xf   :  { %519 = vmatpush3.bf16.msra.mxu0 %v606_v11 }
  0x10   :  { %559 = vmatpush3.bf16.msra.mxu1 %v607_v12  ;;  %520 = vmatprep.subr.bf16.mxu0 %v608_v13 }
  0x11   :  { %560 = vmatprep.subr.bf16.mxu1 %v656_v2 }
  0x13   :  { %521 = vmatpush3.bf16.msra.mxu0 %v609_v14 }
  0x14   :  { %561 = vmatpush3.bf16.msra.mxu1 %v610_v15  ;;  %522 = vmatprep.subr.bf16.mxu0 %v611_v16 }
  0x15   :  { %562 = vmatprep.subr.bf16.mxu1 %v656_v2 }
  0x17   :  { %523 = vmatpush3.bf16.msra.mxu0 %v612_v17 }
  0x18   :  { %563 = vmatpush3.bf16.msra.mxu1 %v613_v18  ;;  %524 = vmatprep.subr.bf16.mxu0 %v614_v19 }
  0x19   :  { %564 = vmatprep.subr.bf16.mxu1 %v656_v2 }
  0x1b   :  { %525 = vmatpush3.bf16.msra.mxu0 %v615_v21 }
  0x1c   :  { %565 = vmatpush3.bf16.msra.mxu1 %v616_v22  ;;  %526 = vmatprep.subr.bf16.mxu0 %v617_v24 }
  0x1d   :  { %566 = vmatprep.subr.bf16.mxu1 %v656_v2 }
  0x1f   :  { %527 = vmatpush3.bf16.msra.mxu0 %v618_v30 }
  0x20   :  { %567 = vmatpush3.bf16.msra.mxu1 %v619_v32 }
  0x21   :  { %10 = vsyncpa [#allocation3], 0  ;;  %572 = vmatprep.subr.bf16.mxu0 %v656_v2  ;;  %v621_v37 = vld [vmem:[%s832_s3 + $0x8] sm:$0xff]   ;;  %v622_v38 = vld [vmem:[%s832_s3 + $0x10] sm:$0xff]   ;;  %vm442_vm1 = vcmask 1041408  }
  0x22   :  { %299 = vmatmul.mubr.bf16.vlgmr.msra.gmra.mrb[0].mxu0 %v110_v35  ;;  %v623_v39 = vld [vmem:[%s832_s3 + $0x18] sm:$0xff]   ;;  %v624_v40 = vld [vmem:[%s832_s3 + $0x20] sm:$0xff]   ;;  %v625_v41 = vld [vmem:[%s832_s3 + $0x28] sm:$0xff]  }
  0x23   :  { %569 = vmatmul.mubr.bf16.vlgmr.msra.gmra.mrb[0].mxu1 %v118_v36  ;;  %573 = vmatpush3.bf16.msra.mxu0 %v620_v33  ;;  %v626_v42 = vld [vmem:[%s832_s3 + $0x30] sm:$0xff]   ;;  %v627_v43 = vld [vmem:[%s832_s3 + $0x38] sm:$0xff]   ;;  %v477_v46 = vld [vmem:[%s831_s2] ss:$0 sm:$0xff]  ;;  %s659_s2 = smov [#allocation2]  }
  0x24   :  { %574 = vmatprep.subr.bf16.mxu0 %v656_v2  ;;  %588 = vmatprep.mubr.msk.bf16.mxu0 %vm657_vm0, %v656_v2  ;;  %v503_v58 = vld [vmem:[%s833_s4] ss:$0 sm:$0xff]  ;;  %s469_s4 = sshll.u32 %s659_s2, 4  ;;  %s470_s4 = int_to_ptr.vmem [resolvable:$true] %s469_s4 }
  0x25   :  { %s632_s10 = scalar_lea.vmem %s470_s4, 32  ;;  %p637_p1 = scmp.lt.s32.totalorder %s470_s4, %s470_s4 }
  0x26   :  { %p633_p0 = scmp.ne.s32.totalorder %s470_s4, %s632_s10  ;;  %p638_p2 = scmp.lt.s32.totalorder %s632_s10, %s632_s10 }
  0x27   :  { %575 = vmatpush3.bf16.msra.mxu0 %v621_v37 }
  0x28   :  { %576 = vmatprep.subr.bf16.mxu0 %v656_v2  ;;  %p639_p3 = por %p638_p2, %p637_p1 }
  0x2a   :  { %p640_p4 = pnand %p639_p3, %p633_p0 }
  0x2b   :  { %577 = vmatpush3.bf16.msra.mxu0 %v622_v38 }
  0x2c   :  { %578 = vmatprep.subr.bf16.mxu0 %v656_v2 }
  0x2f   :  { %579 = vmatpush3.bf16.msra.mxu0 %v623_v39 }
  0x30   :  { %580 = vmatprep.subr.bf16.mxu0 %v656_v2 }
  0x33   :  { %581 = vmatpush3.bf16.msra.mxu0 %v624_v40 }
  0x34   :  { %582 = vmatprep.subr.bf16.mxu0 %v656_v2 }
  0x37   :  { %583 = vmatpush3.bf16.msra.mxu0 %v625_v41 }
  0x38   :  { %584 = vmatprep.subr.bf16.mxu0 %v656_v2 }
  0x3b   :  { %585 = vmatpush3.bf16.msra.mxu0 %v626_v42 }
  0x3c   :  { %586 = vmatprep.subr.bf16.mxu0 %v656_v2 }
  0x3f   :  { %587 = vmatpush3.bf16.msra.mxu0 %v627_v43 }
  0xf5   :  { %v528_v44 = vpop.f32.mrb[0].mxu0 }
  0xf6   :  { %v529_v45 = vpop.f32.mrb[1].mxu0  ;;  %v340_v47 = vpop.f32.mrb[0].mxu1 }
  0xf7   :  { %v530_v48 = vadd.f32 %v529_v45, %v528_v44  ;;  %v531_v49 = vpop.f32.mrb[2].mxu0  ;;  %v570_v50 = vpop.f32.mrb[1].mxu1 }
  0xf8   :  { %v532_v51 = vpop.f32.mrb[3].mxu0  ;;  %v343_v52 = vpop.f32.mrb[2].mxu1 }
  0xf9   :  { %v301_v53 = vadd.f32 %v530_v48, %v477_v46  ;;  %v571_v54 = vpop.f32.mrb[3].mxu1 }
  0xfb   :  { %v341_v55 = vadd.f32 %v340_v47, %v301_v53 }
  0xfd   :  { %v346_v56 = vmax.f32 %v341_v55, 0.0 }
  0xff   :  { %v347_v57 = vpack.c.bf16 %v346_v56, %v346_v56 }
 0x101   :  { %589 = vmatmul.mubr.bf16.vlgmr.msra.gmra.mrb[4].mxu0 %v347_v57 }
 0x1d4   :  { %v436_v59 = vpop.f32.mrb[4].mxu0 }
 0x1d5   :  { %v437_v60 = vadd.f32 %v503_v58, %v436_v59  ;;  %v590_v61 = vpop.f32.mrb[5].mxu0 }
 0x1d6   :  { %v439_v62 = vpop.f32.mrb[6].mxu0 }
 0x1d7   :  { %v443_v63 = vsel %vm442_vm1, %v437_v60, -inf  ;;  %v591_v0 = vpop.f32.mrb[7].mxu0 }
 0x1d8   :  { %v444_v1 = vrot.slane %v443_v63, 4 }
 0x1da   :  { %v445_v2 = vmax.f32 %v443_v63, %v444_v1 }
 0x1dc   :  { %v446_v3 = vrot.slane %v445_v2, 2 }
 0x1de   :  { %v447_v4 = vmax.f32 %v445_v2, %v446_v3 }
 0x1e0   :  { %v448_v5 = vrot.slane %v447_v4, 1 }
 0x1e2   :  { %v449_v6 = vmax.f32 %v447_v4, %v448_v5 }
 0x1e4   :  { %v450_v7 = vsub.f32 %v437_v60, %v449_v6 }
 0x1e6   :  { %v451_v8 = vmul.f32 1.442695, %v450_v7 }
 0x1e8   :  { %628 = vpow2.f32 %v451_v8 }
 0x1f2   :  { %v629_v9 = vpop.eup %628 }
 0x1f3   :  { %v453_v10 = vsel %vm442_vm1, %v629_v9, 0.0 }
 0x1f4   :  { %v454_v11 = vrot.slane %v453_v10, 4 }
 0x1f6   :  { %v455_v12 = vadd.f32 %v454_v11, %v453_v10 }
 0x1f8   :  { %v456_v13 = vrot.slane %v455_v12, 2 }
 0x1fa   :  { %v457_v14 = vadd.f32 %v456_v13, %v455_v12 }
 0x1fc   :  { %v458_v15 = vrot.slane %v457_v14, 1 }
 0x1fe   :  { %v459_v16 = vadd.f32 %v458_v15, %v457_v14 }
 0x200   :  { %630 = vrcp.f32 %v459_v16 }
 0x20a   :  { %v631_v17 = vpop.eup %630 }
 0x20b   :  { %v461_v18 = vmul.f32 %v631_v17, %v629_v9 }
 0x20d   :  { %462 = vst [vmem:[#allocation2] sm:$0x3] %v461_v18 }
 0x20e   :  { %643 = shalt.err (!%p640_p4)
}
 0x20f   :  { %s644_s13 = scalar_lea.hbm %s834_s5, 32 }
 0x210   :  { %p645_p5 = scmp.ne.s32.totalorder %s834_s5, %s644_s13  ;;  %p648_p6 = scmp.lt.u32.totalorder %s644_s13, %s834_s5 }
 0x212   :  { %p650_p7 = pnand %p648_p6, %p645_p5 }
 0x214   :  { %653 = shalt.err (!%p650_p7)
}
 0x215   :  { %472 = dma.vmem_to_hbm [thread:$0]  %s470_s4, 32, %s834_s5, [#allocation3]  }
 0x216   :  { %654 = dma.done.wait [#allocation3], 32  }
 0x217   :  { %655 = vsyncadd [#allocation3], 4294967264 }
 0x218   :  { %476 = vsyncpa [#allocation3], 1 }

</bundles_post_ra>
